<compile_context>
chip_gen: v7x
topology: tpu7x:2x2x1
jax: 0.10.0
libtpu: 0.0.40
codegen_flags: <defaults>
</compile_context>

<pallas_src>
import functools

import jax
import jax.numpy as jnp
from jax import lax
from jax.experimental import pallas as pl
from jax.experimental.pallas import tpu as pltpu


def _round_up(x, m):
    return ((x + m - 1) // m) * m


def _masked_sq_sum_kernel(x_ref, t_ref, m_ref, acc_ref, *, r_tiles, total_rows):
    i = pl.program_id(0)   # parallel chunk
    j = pl.program_id(1)   # reduction step within the chunk

    @pl.when(j == 0)
    def _():
        acc_ref[...] = jnp.zeros_like(acc_ref)

    tm = x_ref.shape[0]
    # Logical (unclamped) row range of this grid step; rows >= total_rows are
    # padding / duplicated data and must not contribute.
    row_start = (i * r_tiles + j) * tm
    row_ids = row_start + lax.broadcasted_iota(jnp.int32, (tm, 1), 0)
    valid = row_ids < total_rows                       # (tm, 1) bool

    x = x_ref[...].astype(jnp.float32)                 # (tm, d)
    t = t_ref[...].astype(jnp.float32)                 # (tm, d)
    m = m_ref[...].astype(jnp.float32)                 # (tm, 1)
    m = jnp.where(valid, m, 0.0)

    diff = x - t
    # Select (not multiply) so garbage bytes in the ragged tail block can't
    # produce NaN * 0 = NaN.
    masked = jnp.where(m != 0.0, diff * m, 0.0)        # (tm, d)

    # Element-wise partial accumulation only (VPU); the final reduce to a
    # scalar happens once, in the wrapper.
    acc_ref[...] += masked * masked


@functools.partial(jax.jit, static_argnames=("tm",))
def masked_mse_loss(inp, target, mask, *, tm=None):
    """inp/target: (n, L, d) float; mask: (n, L) float {0., 1.}. Returns scalar."""
    n, L, d = inp.shape
    M = n * L
    x = inp.reshape(M, d)          # free (metadata-only) reshapes
    t = target.reshape(M, d)
    m = mask.reshape(M, 1)

    if tm is None:
        # Size the row tile against a ~2 MiB lane-padded f32 block so that
        # 2 inputs x 2 buffers + double-buffered accumulator stay well under
        # the scoped VMEM limit on every generation (incl. v7x's 64 MiB).
        d_pad = _round_up(d, 128)
        tm = (2 * 1024 * 1024) // (d_pad * 4)
        tm = max(16, min(1024, tm))
        tm = min(tm, _round_up(M, 16))      # don't exceed the data (rounded)
        tm = _round_up(tm, 16)              # sublane-friendly (also for bf16)
    tm = int(tm)

    num_tiles = pl.cdiv(M, tm)
    n_par = 2 if num_tiles >= 2 else 1      # megacore sharding on v7x
    r_tiles = pl.cdiv(num_tiles, n_par)

    def data_map(i, j):
        # Clamp so fully-out-of-range steps simply re-read the last tile; the
        # in-kernel iota validity check zeroes their contribution.
        return (jnp.minimum(i * r_tiles + j, num_tiles - 1), 0)

    partials = pl.pallas_call(
        functools.partial(_masked_sq_sum_kernel, r_tiles=r_tiles, total_rows=M),
        out_shape=jax.ShapeDtypeStruct((n_par * tm, d), jnp.float32),
        grid_spec=pltpu.PrefetchScalarGridSpec(
            num_scalar_prefetch=0,
            grid=(n_par, r_tiles),
            in_specs=[
                pl.BlockSpec((tm, d), data_map),
                pl.BlockSpec((tm, d), data_map),
                pl.BlockSpec((tm, 1), data_map),
            ],
            out_specs=pl.BlockSpec((tm, d), lambda i, j: (i, 0)),
        ),
        compiler_params=pltpu.CompilerParams(
            dimension_semantics=("parallel", "arbitrary"),
            vmem_limit_bytes=32 * 1024 * 1024,
        ),
    )(x, t, m)

    # Tiny final reductions / division stay in plain JAX.
    num = jnp.sum(partials)
    den = jnp.sum(mask.astype(jnp.float32)) * jnp.float32(d) + jnp.float32(1e-6)
    return (num / den).astype(inp.dtype)


def _reference(inp, target, mask):
    mask_e = jnp.broadcast_to(mask[:, :, None], inp.shape)
    loss = jnp.sum(((inp - target) * mask_e) ** 2)
    return loss / (jnp.sum(mask_e) + 1e-6)


if __name__ == "__main__":
    key = jax.random.PRNGKey(0)
    k1, k2, k3 = jax.random.split(key, 3)

    # Small shape consistent with the module: (n, L, d) = (2, 8, 32).
    n, L, d = 2, 8, 32
    inp = jax.random.normal(k1, (n, L, d), dtype=jnp.float32)
    target = jax.random.normal(k2, (n, L, d), dtype=jnp.float32)
    mask = (jax.random.uniform(k3, (n, L)) > 0.3).astype(jnp.float32)

    loss = masked_mse_loss(inp, target, mask)
    loss = jax.block_until_ready(loss)
    ref = _reference(inp, target, mask)
    assert jnp.allclose(loss, ref, rtol=1e-5, atol=1e-6), (loss, ref)

    # Exercise the ragged-tail / multi-tile / parallel-chunk path (M = 111 is
    # not tile aligned; forcing tm=16 gives 7 tiles split over 2 chunks with
    # one fully out-of-range clamped step).
    k4, k5, k6 = jax.random.split(k3, 3)
    n2, L2, d2 = 3, 37, 32
    inp2 = jax.random.normal(k4, (n2, L2, d2), dtype=jnp.float32)
    target2 = jax.random.normal(k5, (n2, L2, d2), dtype=jnp.float32)
    mask2 = (jax.random.uniform(k6, (n2, L2)) > 0.5).astype(jnp.float32)

    loss2 = jax.block_until_ready(masked_mse_loss(inp2, target2, mask2, tm=16))
    ref2 = _reference(inp2, target2, mask2)
    assert jnp.allclose(loss2, ref2, rtol=1e-5, atol=1e-6), (loss2, ref2)

    print("KERNEL_OK")
</pallas_src>

<mosaic_0001>
module attributes {stable_mosaic.version = 11 : i64} {
  func.func @_masked_sq_sum_kernel(%arg0: i32, %arg1: i32, %arg2: memref<16x32xf32, #tpu.memory_space<vmem>>, %arg3: memref<16x32xf32, #tpu.memory_space<vmem>>, %arg4: memref<16x1xf32, #tpu.memory_space<vmem>>, %arg5: memref<16x32xf32, #tpu.memory_space<vmem>>) attributes {dimension_semantics = [#tpu.dimension_semantics<parallel>, #tpu.dimension_semantics<arbitrary>], iteration_bounds = array<i64: 1, 1>, scalar_prefetch = 0 : i64, scratch_operands = 0 : i64, tpu.core_type = #tpu.core_type<tc>, window_params = [{transform_indices = @transform_0, window_bounds = array<i64: 16, 32>}, {transform_indices = @transform_1, window_bounds = array<i64: 16, 32>}, {transform_indices = @transform_2, window_bounds = array<i64: 16, 1>}, {transform_indices = @transform_3, window_bounds = array<i64: 16, 32>}]} {
    %c0_i32 = arith.constant 0 : i32
    %0 = arith.cmpi eq, %arg1, %c0_i32 : i32
    %1 = arith.extui %0 : i1 to i32
    %c0_i32_0 = arith.constant 0 : i32
    %2 = arith.cmpi ne, %1, %c0_i32_0 : i32
    scf.if %2 {
      %cst_13 = arith.constant 0.000000e+00 : f32
      %29 = vector.broadcast %cst_13 : f32 to vector<16x32xf32>
      %c0_14 = arith.constant 0 : index
      %c0_15 = arith.constant 0 : index
      %30 = vector.load %arg5[%c0_14, %c0_15] : memref<16x32xf32, #tpu.memory_space<vmem>>, vector<16x32xf32>
      tpu.vector_store %arg5[%c0_14, %c0_15], %29 {strides = array<i32>} : memref<16x32xf32, #tpu.memory_space<vmem>>, vector<16x32xf32>,
    } else {
    }
    %c1_i32 = arith.constant 1 : i32
    %3 = arith.muli %arg0, %c1_i32 : i32
    %4 = arith.addi %3, %arg1 : i32
    %c16_i32 = arith.constant 16 : i32
    %5 = arith.muli %4, %c16_i32 : i32
    %6 = tpu.iota {dimensions = array<i32: 0>} : vector<16x1xi32>
    %7 = vector.broadcast %5 : i32 to vector<16x1xi32>
    %8 = arith.addi %7, %6 : vector<16x1xi32>
    %c16_i32_1 = arith.constant 16 : i32
    %9 = vector.broadcast %c16_i32_1 : i32 to vector<16x1xi32>
    %10 = arith.cmpi slt, %8, %9 : vector<16x1xi32>
    %c0 = arith.constant 0 : index
    %c0_2 = arith.constant 0 : index
    %11 = vector.load %arg2[%c0, %c0_2] : memref<16x32xf32, #tpu.memory_space<vmem>>, vector<16x32xf32>
    %c0_3 = arith.constant 0 : index
    %c0_4 = arith.constant 0 : index
    %12 = vector.load %arg3[%c0_3, %c0_4] : memref<16x32xf32, #tpu.memory_space<vmem>>, vector<16x32xf32>
    %c0_5 = arith.constant 0 : index
    %c0_6 = arith.constant 0 : index
    %13 = vector.load %arg4[%c0_5, %c0_6] : memref<16x1xf32, #tpu.memory_space<vmem>>, vector<16x1xf32>
    %cst = arith.constant 0.000000e+00 : f32
    %14 = vector.broadcast %cst : f32 to vector<16x1xf32>
    %15 = arith.select %10, %13, %14 : vector<16x1xi1>, vector<16x1xf32>
    %16 = arith.subf %11, %12 : vector<16x32xf32>
    %cst_7 = arith.constant 0.000000e+00 : f32
    %17 = vector.broadcast %cst_7 : f32 to vector<16x1xf32>
    %18 = arith.cmpf one, %15, %17 : vector<16x1xf32>
    %19 = vector.broadcast %15 : vector<16x1xf32> to vector<16x32xf32>
    %20 = arith.mulf %16, %19 : vector<16x32xf32>
    %cst_8 = arith.constant 0.000000e+00 : f32
    %21 = vector.shape_cast %18 : vector<16x1xi1> to vector<16x1xi1>
    %22 = vector.broadcast %21 : vector<16x1xi1> to vector<16x32xi1>
    %23 = vector.broadcast %cst_8 : f32 to vector<16x32xf32>
    %24 = arith.select %22, %20, %23 : vector<16x32xi1>, vector<16x32xf32>
    %c0_9 = arith.constant 0 : index
    %c0_10 = arith.constant 0 : index
    %25 = vector.load %arg5[%c0_9, %c0_10] : memref<16x32xf32, #tpu.memory_space<vmem>>, vector<16x32xf32>
    %26 = arith.mulf %24, %24 : vector<16x32xf32>
    %27 = arith.addf %25, %26 : vector<16x32xf32>
    %c0_11 = arith.constant 0 : index
    %c0_12 = arith.constant 0 : index
    %28 = vector.load %arg5[%c0_11, %c0_12] : memref<16x32xf32, #tpu.memory_space<vmem>>, vector<16x32xf32>
    tpu.vector_store %arg5[%c0_11, %c0_12], %27 {strides = array<i32>} : memref<16x32xf32, #tpu.memory_space<vmem>>, vector<16x32xf32>,
    return
  }
  func.func @transform_0(%arg0: i32, %arg1: i32) -> (i32, i32) {
    %c1_i32 = arith.constant 1 : i32
    %0 = arith.muli %arg0, %c1_i32 : i32
    %1 = arith.addi %0, %arg1 : i32
    %c0_i32 = arith.constant 0 : i32
    %2 = arith.minsi %1, %c0_i32 : i32
    %c0_i32_0 = arith.constant 0 : i32
    %c0_i32_1 = arith.constant 0 : i32
    return %2, %c0_i32_0 : i32, i32
  }
  func.func @transform_1(%arg0: i32, %arg1: i32) -> (i32, i32) {
    %c1_i32 = arith.constant 1 : i32
    %0 = arith.muli %arg0, %c1_i32 : i32
    %1 = arith.addi %0, %arg1 : i32
    %c0_i32 = arith.constant 0 : i32
    %2 = arith.minsi %1, %c0_i32 : i32
    %c0_i32_0 = arith.constant 0 : i32
    %c0_i32_1 = arith.constant 0 : i32
    return %2, %c0_i32_0 : i32, i32
  }
  func.func @transform_2(%arg0: i32, %arg1: i32) -> (i32, i32) {
    %c1_i32 = arith.constant 1 : i32
    %0 = arith.muli %arg0, %c1_i32 : i32
    %1 = arith.addi %0, %arg1 : i32
    %c0_i32 = arith.constant 0 : i32
    %2 = arith.minsi %1, %c0_i32 : i32
    %c0_i32_0 = arith.constant 0 : i32
    %c0_i32_1 = arith.constant 0 : i32
    return %2, %c0_i32_0 : i32, i32
  }
  func.func @transform_3(%arg0: i32, %arg1: i32) -> (i32, i32) {
    %c0_i32 = arith.constant 0 : i32
    %c0_i32_0 = arith.constant 0 : i32
    return %arg0, %c0_i32 : i32, i32
  }
}

</mosaic_0001>

<bundles_post_ra>
// kernel: masked_mse_loss.1
= control target key start
LH: loop header
LB: loop body
LE: loop exit
PB: predicated region body
PF: predicated region fallthrough
CT: control target
= control target key end

     0   :  { %8 = vsyncpa [#allocation3], 0  ;;  %s214_s12 = smov [#allocation2]   ;;  %s285_s0 = inlined_call_operand.vmem [shape: f32[16,32], index: 0, kind: input, shape index: {}]   ;;  %s286_s1 = inlined_call_operand.hbm [shape: f32[16,32], index: 1, kind: input, shape index: {}]   ;;  %s287_s2 = inlined_call_operand.vmem [shape: f32[16,1], index: 2, kind: input, shape index: {}]   ;;  %s288_s3 = inlined_call_operand.vmem [shape: f32[16,32], index: 3, kind: output, shape index: {}]  }
   0x1   :  { %s34_s13 = sshll.u32 %s214_s12, 4  ;;  %s190_s16 = scalar_lea.hbm %s286_s1, 256  ;;  %s35_s13 = int_to_ptr.vmem [resolvable:$true] %s34_s13 }
   0x2   :  { %p191_p0 = scmp.ne.s32.totalorder %s286_s1, %s190_s16  ;;  %p194_p1 = scmp.lt.u32.totalorder %s190_s16, %s286_s1 }
   0x4   :  { %p196_p2 = pnand %p194_p1, %p191_p0 }
   0x6   :  { %199 = shalt.err (!%p196_p2)
}
   0x7   :  { %s200_s21 = scalar_lea.vmem %s35_s13, 256  ;;  %p205_p4 = scmp.lt.s32.totalorder %s35_s13, %s35_s13 }
   0x8   :  { %p201_p3 = scmp.ne.s32.totalorder %s35_s13, %s200_s21  ;;  %p206_p5 = scmp.lt.s32.totalorder %s200_s21, %s200_s21 }
   0xa   :  { %p207_p6 = por %p206_p5, %p205_p4 }
   0xc   :  { %p208_p7 = pnand %p207_p6, %p201_p3 }
   0xe   :  { %211 = shalt.err (!%p208_p7)
}
   0xf   :  { %s215_s22 = smov 128   ;;  %s216_s23 = smov 8  }
  0x10   :  { %40 = dma.hbm_to_vmem [thread:$0]  %s286_s1, 256, %s35_s13, [#allocation3], %s215_s22, %s215_s22, %s216_s23  }
  0x11   :  { %212 = dma.done.wait [#allocation3], 256  }
  0x12   :  { %213 = vsyncadd [#allocation3], 4294967040  ;;  %v217_v0 = vmov 0   ;;  %vm106_vm0 = vcmask 261120   ;;  %v218_v1 = vmov 0.0   ;;  %v123_v2 = vld [vmem:[%s287_s2] sm:$0xff] }
  0x13   :  { %188 = vset.pattern.permute.xlu0 %v217_v0  ;;  %189 = vset.pattern.permute.xlu1 %v217_v0  ;;  %107 = vst.msk [vmem:[%s288_s3] sm:$0xff] %vm106_vm0, %v218_v1  ;;  %108 = vst.msk [vmem:[%s288_s3 + $0x8] sm:$0xff] %vm106_vm0, %v218_v1  ;;  %v124_v3 = vld [vmem:[%s287_s2 + $0x8] sm:$0xff]  ;;  %vm129_vm1 = vcmp.ne.f32.partialorder %v123_v2, 0.0  ;;  %v119_v6 = vld [vmem:[%s285_s0] sm:$0xff] }
  0x14   :  { %133 = vperm.xlu0 %188, %v123_v2   ;;  %vm130_vm2 = vcmp.ne.f32.partialorder %v124_v3, 0.0  ;;  %v143_v4 = vsel %vm129_vm1, 1, %v217_v0  ;;  %v121_v7 = vld [vmem:[#allocation2] sm:$0xff]  ;;  %v120_v9 = vld [vmem:[%s285_s0 + $0x8] sm:$0xff] }
  0x15   :  { %146 = vperm.xlu1 %189, %v143_v4   ;;  %v144_v5 = vsel %vm130_vm2, 1, %v217_v0  ;;  %v127_v8 = vsub.f32 %v119_v6, %v121_v7  ;;  %v122_v10 = vld [vmem:[#allocation2 + $0x8] sm:$0xff] }
  0x16   :  { %v128_v13 = vsub.f32 %v120_v9, %v122_v10 }
  0x18   :  { %138 = vperm.xlu0 %188, %v124_v3  }
  0x19   :  { %149 = vperm.xlu1 %189, %v144_v5  }
  0x1a   :  { %v155_v16 = vld [vmem:[%s288_s3] sm:$0xff]  ;;  %v156_v23 = vld [vmem:[%s288_s3 + $0x8] sm:$0xff] }
  0x93   :  { %v134_v11 = vpop.permute.xlu0 %133 }
  0x94   :  { %v141_v12 = vmul.f32 %v134_v11, %v127_v8  ;;  %v147_v14 = vpop.permute.xlu1 %146 }
  0x95   :  { %vm151_vm3 = vcmp.eq.s32.totalorder %v147_v14, 1 }
  0x96   :  { %v153_v15 = vsel %vm151_vm3, %v141_v12, 0.0 }
  0x97   :  { %v139_v17 = vpop.permute.xlu0 %138  ;;  %v157_v18 = vmul.f32 %v153_v15, %v153_v15 }
  0x98   :  { %v142_v19 = vmul.f32 %v139_v17, %v128_v13  ;;  %v150_v20 = vpop.permute.xlu1 %149 }
  0x99   :  { %v159_v21 = vadd.f32 %v157_v18, %v155_v16  ;;  %vm152_vm4 = vcmp.eq.s32.totalorder %v150_v20, 1 }
  0x9a   :  { %v154_v22 = vsel %vm152_vm4, %v142_v19, 0.0 }
  0x9b   :  { %162 = vst.msk [vmem:[%s288_s3] sm:$0xff] %vm106_vm0, %v159_v21  ;;  %v158_v24 = vmul.f32 %v154_v22, %v154_v22 }
  0x9d   :  { %v160_v25 = vadd.f32 %v158_v24, %v156_v23 }
  0x9f   :  { %163 = vst.msk [vmem:[%s288_s3 + $0x8] sm:$0xff] %vm106_vm0, %v160_v25 }
  0xa0   :  { %168 = vsyncpa [#allocation3], 1 }

</bundles_post_ra>
